<compile_context>
chip_gen: v6e
topology: v6e:2x2x1
jax: 0.10.0
libtpu: 0.0.40
codegen_flags: <defaults>
</compile_context>

<pallas_src>
import functools

import jax
import jax.numpy as jnp
from jax.experimental import pallas as pl
from jax.experimental.pallas import tpu as pltpu


_LANE = 128
_VMEM_BUDGET = 24 * 1024 * 1024  # target in-kernel footprint, fits every generation


def _round_up(x, m):
    return (x + m - 1) // m * m


def _prep_features(x):
    """Flatten NCHW -> (N*C, H*W). No padding here."""
    d0, d1, d2, d3 = x.shape
    m, k = d0 * d1, d2 * d3
    return x.reshape(m, k), m, k


def _plan_k_tiling(k, m, itemsize, resident_bytes):
    """Pick (k_pad, tk) given the VMEM budget.

    Avoids padding K when a single full-K block fits; otherwise pads K to a
    multiple of 128 and tiles it with the largest 128-multiple divisor whose
    double-buffered tile fits the remaining budget.
    """
    avail = max(_VMEM_BUDGET - resident_bytes, 2 * m * _LANE * itemsize)
    max_tk = max(avail // (2 * m * itemsize), _LANE)

    if k % _LANE == 0:
        k_pad = k
    elif 2 * m * k * itemsize <= avail:
        return k, k  # single full-K block: no padding, no K grid
    else:
        # TODO(synk): mask the ragged last K tile in-kernel (broadcasted_iota)
        # instead of materializing a padded copy in HBM.
        k_pad = _round_up(k, _LANE)

    tk = _LANE
    t = _LANE
    while t <= k_pad:
        if k_pad % t == 0 and t <= max_tk:
            tk = t
        t += _LANE
    return k_pad, tk


# ------------------------------- kernels ------------------------------------


def _gram_kernel(f_ref, g_ref, *, inv_total):
    """Accumulate F_tile @ F_tile.T directly into the resident output block."""
    kk = pl.program_id(0)

    @pl.when(kk == 0)
    def _():
        g_ref[...] = jnp.zeros_like(g_ref)

    f = f_ref[...]  # native dtype -> MXU directly, f32 accumulate
    g_ref[...] += jax.lax.dot_general(
        f, f,
        dimension_numbers=(((1,), (1,)), ((), ())),  # contract on H*W axis
        preferred_element_type=jnp.float32,
    )

    @pl.when(kk == pl.num_programs(0) - 1)
    def _():
        g_ref[...] *= jnp.float32(inv_total)


def _style_loss_kernel(f_ref, t_hbm_ref, loss_ref, acc_ref, t_vmem_ref, t_sem,
                       *, inv_total, inv_mse):
    """Gram of input features (K-tiled) + MSE vs. target Gram DMA'd once."""
    kk = pl.program_id(0)

    @pl.when(kk == 0)
    def _():
        acc_ref[...] = jnp.zeros_like(acc_ref)
        # Start the one-shot target-Gram transfer; it overlaps with the matmuls.
        pltpu.make_async_copy(t_hbm_ref, t_vmem_ref, t_sem).start()

    f = f_ref[...]
    acc_ref[...] += jax.lax.dot_general(
        f, f,
        dimension_numbers=(((1,), (1,)), ((), ())),
        preferred_element_type=jnp.float32,
    )

    @pl.when(kk == pl.num_programs(0) - 1)
    def _():
        pltpu.make_async_copy(t_hbm_ref, t_vmem_ref, t_sem).wait()
        diff = acc_ref[...] * jnp.float32(inv_total) - t_vmem_ref[...]
        loss_ref[...] = (jnp.sum(diff * diff) * jnp.float32(inv_mse)).reshape(1, 1)


# ------------------------------ wrappers -------------------------------------


def _gram_call(f, m, k, inv_total):
    itemsize = jnp.dtype(f.dtype).itemsize
    resident = 2 * m * m * 4  # output block (conservatively assume 2 buffers)
    k_pad, tk = _plan_k_tiling(k, m, itemsize, resident)
    if k_pad != k:
        f = jnp.pad(f, ((0, 0), (0, k_pad - k)))
    grid_k = k_pad // tk
    footprint = resident + 2 * m * tk * itemsize
    vmem_limit = min(64 << 20, max(16 << 20, footprint + (8 << 20)))

    kernel = functools.partial(_gram_kernel, inv_total=inv_total)
    return pl.pallas_call(
        kernel,
        out_shape=jax.ShapeDtypeStruct((m, m), jnp.float32),
        grid_spec=pltpu.PrefetchScalarGridSpec(
            num_scalar_prefetch=0,
            grid=(grid_k,),
            in_specs=[pl.BlockSpec((m, tk), lambda kk: (0, kk))],
            out_specs=pl.BlockSpec((m, m), lambda kk: (0, 0)),
        ),
        compiler_params=pltpu.CompilerParams(
            dimension_semantics=("arbitrary",),
            vmem_limit_bytes=vmem_limit),
        cost_estimate=pl.CostEstimate(
            flops=2 * m * m * k_pad,
            transcendentals=0,
            bytes_accessed=itemsize * m * k_pad + 4 * m * m),
    )(f)


def normalised_gram_matrix(x):
    """Pallas equivalent of normalisedGramMatrix(x) for NCHW input x."""
    d0, d1, d2, d3 = x.shape
    f, m, k = _prep_features(x)
    inv_total = 1.0 / float(d0 * d1 * d2 * d3)
    return _gram_call(f, m, k, inv_total)


def _style_loss_call(x, target_gram):
    d0, d1, d2, d3 = x.shape
    f, m, k = _prep_features(x)
    if target_gram.shape != (m, m):
        raise ValueError(
            f"target Gram shape {target_gram.shape} incompatible with input "
            f"features ({m}, {m})")

    itemsize = jnp.dtype(f.dtype).itemsize
    resident = 2 * m * m * 4  # f32 Gram accumulator + single-buffered target
    k_pad, tk = _plan_k_tiling(k, m, itemsize, resident)
    if k_pad != k:
        f = jnp.pad(f, ((0, 0), (0, k_pad - k)))
    grid_k = k_pad // tk
    footprint = resident + 2 * m * tk * itemsize
    vmem_limit = min(64 << 20, max(16 << 20, footprint + (8 << 20)))

    inv_total = 1.0 / float(d0 * d1 * d2 * d3)
    inv_mse = 1.0 / float(m * m)  # MSE over the original M x M Gram

    kernel = functools.partial(
        _style_loss_kernel, inv_total=inv_total, inv_mse=inv_mse)
    loss = pl.pallas_call(
        kernel,
        out_shape=jax.ShapeDtypeStruct((1, 1), jnp.float32),
        grid_spec=pltpu.PrefetchScalarGridSpec(
            num_scalar_prefetch=0,
            grid=(grid_k,),
            in_specs=[
                pl.BlockSpec((m, tk), lambda kk: (0, kk)),
                # Target Gram stays in HBM; copied once into a single VMEM buffer.
                pl.BlockSpec(memory_space=pl.ANY),
            ],
            out_specs=pl.BlockSpec((1, 1), lambda kk: (0, 0)),
            scratch_shapes=[
                pltpu.VMEM((m, m), jnp.float32),   # Gram accumulator
                pltpu.VMEM((m, m), jnp.float32),   # target Gram landing buffer
                pltpu.SemaphoreType.DMA(()),       # target copy completion
            ],
        ),
        compiler_params=pltpu.CompilerParams(
            dimension_semantics=("arbitrary",),
            vmem_limit_bytes=vmem_limit),
        cost_estimate=pl.CostEstimate(
            flops=2 * m * m * k_pad,
            transcendentals=0,
            bytes_accessed=itemsize * m * k_pad + 8 * m * m + 4),
    )(f, target_gram)
    return loss[0, 0]


class StyleLoss:
    """JAX/Pallas port of the PyTorch StyleLoss module (forward pass)."""

    def __init__(self, target_feature):
        # .detach() equivalent: stop_gradient on the precomputed target Gram.
        self.target = jax.lax.stop_gradient(normalised_gram_matrix(target_feature))
        self.loss = None

    def __call__(self, input_tensor):
        # TODO(synk): no custom_vjp is wired for the loss kernel, so jax.grad
        # through this forward (as the PyTorch module is typically used) is
        # not supported yet.
        self.loss = _style_loss_call(input_tensor, self.target)
        return input_tensor  # forward returns the input unchanged


if __name__ == "__main__":
    key = jax.random.PRNGKey(0)
    k_tgt, k_in = jax.random.split(key)

    # Small NCHW shapes: batch=2, channels=4, spatial=16x16.
    target_feature = jax.random.normal(k_tgt, (2, 4, 16, 16), dtype=jnp.float32)
    input_tensor = jax.random.normal(k_in, (2, 4, 16, 16), dtype=jnp.float32)

    module = StyleLoss(target_feature)
    out = module(input_tensor)
    out = jax.block_until_ready(out)
    loss = jax.block_until_ready(module.loss)

    # Lightweight correctness check against a pure-JAX reference.
    def ref_gram(x):
        d0, d1, d2, d3 = x.shape
        fm = x.reshape(d0 * d1, d2 * d3)
        return (fm @ fm.T) / (d0 * d1 * d2 * d3)

    ref_loss = jnp.mean((ref_gram(input_tensor) - ref_gram(target_feature)) ** 2)
    gram_in = jax.block_until_ready(normalised_gram_matrix(input_tensor))

    assert jnp.allclose(out, input_tensor), "forward must return input unchanged"
    assert jnp.allclose(gram_in, ref_gram(input_tensor), rtol=1e-5, atol=1e-6)
    assert jnp.allclose(module.target, ref_gram(target_feature), rtol=1e-5, atol=1e-6)
    assert jnp.allclose(loss, ref_loss, rtol=1e-5, atol=1e-6), (loss, ref_loss)

    print("KERNEL_OK")
</pallas_src>

<mosaic_0001>
module attributes {stable_mosaic.version = 11 : i64} {
  func.func @_gram_kernel(%arg0: i32, %arg1: memref<8x256xf32, #tpu.memory_space<vmem>>, %arg2: memref<8x8xf32, #tpu.memory_space<vmem>>) attributes {dimension_semantics = [#tpu.dimension_semantics<arbitrary>], iteration_bounds = array<i64: 1>, scalar_prefetch = 0 : i64, scratch_operands = 0 : i64, tpu.core_type = #tpu.core_type<tc>, window_params = [{transform_indices = @transform_0, window_bounds = array<i64: 8, 256>}, {pipeline_mode = #tpu.pipeline_mode<synchronous>, transform_indices = @transform_1, window_bounds = array<i64: 8, 8>}]} {
    %c0_i32 = arith.constant 0 : i32
    %0 = arith.cmpi eq, %arg0, %c0_i32 : i32
    %1 = arith.extui %0 : i1 to i32
    %c0_i32_0 = arith.constant 0 : i32
    %2 = arith.cmpi ne, %1, %c0_i32_0 : i32
    scf.if %2 {
      %cst_8 = arith.constant 0.000000e+00 : f32
      %11 = vector.broadcast %cst_8 : f32 to vector<8x8xf32>
      %c0_9 = arith.constant 0 : index
      %c0_10 = arith.constant 0 : index
      %12 = vector.load %arg2[%c0_9, %c0_10] : memref<8x8xf32, #tpu.memory_space<vmem>>, vector<8x8xf32>
      tpu.vector_store %arg2[%c0_9, %c0_10], %11 {strides = array<i32>} : memref<8x8xf32, #tpu.memory_space<vmem>>, vector<8x8xf32>,
    } else {
    }
    %c0 = arith.constant 0 : index
    %c0_1 = arith.constant 0 : index
    %3 = vector.load %arg1[%c0, %c0_1] : memref<8x256xf32, #tpu.memory_space<vmem>>, vector<8x256xf32>
    %c0_2 = arith.constant 0 : index
    %c0_3 = arith.constant 0 : index
    %4 = vector.load %arg2[%c0_2, %c0_3] : memref<8x8xf32, #tpu.memory_space<vmem>>, vector<8x8xf32>
    %cst = arith.constant dense<0.000000e+00> : vector<8x8xf32>
    %5 = tpu.matmul %3, %3, %cst {dimension_numbers = #tpu.dot_dimension_numbers<[1], [1], [0], [0], [0, 0, 1, 0], [], []>} : vector<8x256xf32>, vector<8x256xf32>, vector<8x8xf32> -> vector<8x8xf32>
    %6 = arith.addf %4, %5 : vector<8x8xf32>
    %c0_4 = arith.constant 0 : index
    %c0_5 = arith.constant 0 : index
    %7 = vector.load %arg2[%c0_4, %c0_5] : memref<8x8xf32, #tpu.memory_space<vmem>>, vector<8x8xf32>
    tpu.vector_store %arg2[%c0_4, %c0_5], %6 {strides = array<i32>} : memref<8x8xf32, #tpu.memory_space<vmem>>, vector<8x8xf32>,
    %c0_i32_6 = arith.constant 0 : i32
    %8 = arith.cmpi eq, %arg0, %c0_i32_6 : i32
    %9 = arith.extui %8 : i1 to i32
    %c0_i32_7 = arith.constant 0 : i32
    %10 = arith.cmpi ne, %9, %c0_i32_7 : i32
    scf.if %10 {
      %c0_8 = arith.constant 0 : index
      %c0_9 = arith.constant 0 : index
      %11 = vector.load %arg2[%c0_8, %c0_9] : memref<8x8xf32, #tpu.memory_space<vmem>>, vector<8x8xf32>
      %cst_10 = arith.constant 4.8828125E-4 : f32
      %12 = vector.broadcast %cst_10 : f32 to vector<8x8xf32>
      %13 = arith.mulf %11, %12 : vector<8x8xf32>
      %c0_11 = arith.constant 0 : index
      %c0_12 = arith.constant 0 : index
      %14 = vector.load %arg2[%c0_11, %c0_12] : memref<8x8xf32, #tpu.memory_space<vmem>>, vector<8x8xf32>
      tpu.vector_store %arg2[%c0_11, %c0_12], %13 {strides = array<i32>} : memref<8x8xf32, #tpu.memory_space<vmem>>, vector<8x8xf32>,
    } else {
    }
    return
  }
  func.func @transform_0(%arg0: i32) -> (i32, i32) {
    %c0_i32 = arith.constant 0 : i32
    %c0_i32_0 = arith.constant 0 : i32
    return %c0_i32, %arg0 : i32, i32
  }
  func.func @transform_1(%arg0: i32) -> (i32, i32) {
    %c0_i32 = arith.constant 0 : i32
    %c0_i32_0 = arith.constant 0 : i32
    %c0_i32_1 = arith.constant 0 : i32
    return %c0_i32, %c0_i32_0 : i32, i32
  }
}

</mosaic_0001>

<bundles_post_ra>
// kernel: tpu_custom_call.1
= control target key start
LH: loop header
LB: loop body
LE: loop exit
PB: predicated region body
PF: predicated region fallthrough
CT: control target
= control target key end

     0   :  { %6 = vsyncpa [#allocation3], 0  ;;  %s193_s0 = inlined_call_operand.hbm [shape: f32[8,256], index: 0, kind: input, shape index: {}]   ;;  %s194_s1 = inlined_call_operand.hbm [shape: f32[8,8], index: 1, kind: output, shape index: {}]  }
   0x1   :  { %7 = vsyncpa [#allocation4], 0  ;;  %s171_s6 = smov [#allocation2]  }
   0x2   :  { %s14_s7 = sshll.u32 %s171_s6, 4  ;;  %s15_s7 = int_to_ptr.vmem [resolvable:$true] %s14_s7 }
   0x3   :  { %s135_s8 = scalar_lea.vmem %s15_s7, 256  ;;  %p140_p1 = scmp.lt.s32.totalorder %s15_s7, %s15_s7 }
   0x4   :  { %p136_p0 = scmp.ne.s32.totalorder %s15_s7, %s135_s8  ;;  %p141_p2 = scmp.lt.s32.totalorder %s135_s8, %s135_s8 }
   0x6   :  { %p142_p3 = por %p141_p2, %p140_p1 }
   0x8   :  { %p143_p4 = pnand %p142_p3, %p136_p0 }
   0xa   :  { %146 = shalt.err (!%p143_p4)
}
   0xb   :  { %17 = dma.hbm_to_vmem [thread:$0]  %s193_s0, 256, %s15_s7, [#allocation3]  }
   0xc   :  { %167 = dma.done.wait [#allocation3], 256  }
   0xd   :  { %168 = vsyncadd [#allocation3], 4294967040  ;;  %vm25_vm0 = vcmask 64512   ;;  %v172_v0 = vmov 0.0   ;;  %v28_v1 = vld [vmem:[#allocation2 + $0x8] sm:$0xff]  ;;  %v27_v2 = vld [vmem:[#allocation2] sm:$0xff] }
   0xe   :  { %26 = vst.msk [vmem:[#allocation5] sm:$0xff] %vm25_vm0, %v172_v0  ;;  %60 = vmatprep.subr.mxu0 %v28_v1  ;;  %94 = vmatprep.mubr.f32.mxu0 %v28_v1  ;;  %s173_s11 = smov [#allocation5]  }
   0xf   :  { %61 = vmatpush1.xpose.msra.mxu0 %v27_v2  ;;  %s115_s0 = sshll.u32 %s173_s11, 4  ;;  %s116_s0 = int_to_ptr.vmem [resolvable:$true] %s115_s0 }
  0x10   :  { %s147_s12 = scalar_lea.vmem %s116_s0, 128  ;;  %p152_p6 = scmp.lt.s32.totalorder %s116_s0, %s116_s0 }
  0x11   :  { %p148_p5 = scmp.ne.s32.totalorder %s116_s0, %s147_s12  ;;  %p153_p7 = scmp.lt.s32.totalorder %s147_s12, %s147_s12 }
  0x12   :  { %95 = vmatmul.mubr.f32.vlgmr.msra.gmra.mxu0 %v27_v2 }
  0x13   :  { %p154_p8 = por %p153_p7, %p152_p6 }
  0x15   :  { %v29_v3 = vld [vmem:[#allocation5] sm:$0xff]  ;;  %p155_p9 = pnand %p154_p8, %p148_p5 }
  0xd2   :  { %v96_v4 = vpop.f32.mrf.mxu0 }
  0xd3   :  { %v100_v5 = vadd.f32 %v96_v4, %v29_v3 }
  0xd4   :  { %v98_v6 = vpop.f32.mrf.mxu0 }
  0xd5   :  { %102 = vst.msk [vmem:[#allocation5] sm:$0xff] %vm25_vm0, %v100_v5 }
  0xdc   :  { %v106_v7 = vld [vmem:[#allocation5] sm:$0xff] }
  0xdd   :  { %v107_v8 = vmul.f32 0.00048828125, %v106_v7 }
  0xdf   :  { %108 = vst.msk [vmem:[#allocation5] sm:$0xff] %vm25_vm0, %v107_v8 }
  0xe0   :  { %158 = shalt.err (!%p155_p9)
}
  0xe1   :  { %118 = dma.vmem_to_hbm [thread:$0]  %s116_s0, 128, %s194_s1, [#allocation4]  }
  0xe2   :  { %169 = dma.done.wait [#allocation4], 128  }
  0xe3   :  { %170 = vsyncadd [#allocation4], 4294967168 }
  0xe4   :  { %122 = vsyncpa [#allocation3], 1 }
  0xe5   :  { %123 = vsyncpa [#allocation4], 1 }

</bundles_post_ra>
